<compile_context>
chip_gen: v7x
topology: tpu7x:2x2x1
jax: 0.10.0
libtpu: 0.0.40
codegen_flags: <defaults>
</compile_context>

<pallas_src>
import math

import jax
import jax.numpy as jnp
from jax.experimental import pallas as pl
from jax.experimental.pallas import tpu as pltpu

IN_FEATURES = 50
OUT_FEATURES = 50
DEFAULT_BLOCK_ROWS = 1024   # batch tile rows; (1024, 50) f32 ~= 200 KiB


def _round_up(n, m):
    return ((n + m - 1) // m) * m


def _drift_kernel(x_ref, w_ref, b_ref, o_ref):
    # x_ref: (TB, 50), w_ref: (50, 50) [in, out], b_ref: (1, 50), o_ref: (TB, 50)
    y = jnp.dot(x_ref[...], w_ref[...], preferred_element_type=jnp.float32)
    o_ref[...] = jnp.maximum(y + b_ref[...], 0.0).astype(o_ref.dtype)


def prepare_drift_params(weight, bias):
    """One-time conversion of PyTorch-layout params to the kernel layout.

    Args:
      weight: (50, 50) float32, PyTorch layout (out_features, in_features).
      bias:   (50,)   float32.
    Returns:
      w_t: (50, 50) float32, (in, out) layout (no feature padding — keeping the
           real 50-lane width minimizes HBM bytes on this memory-bound kernel).
      b:   (1, 50)  float32.
    """
    w_t = jnp.asarray(weight, jnp.float32).T                     # (in, out)
    b = jnp.asarray(bias, jnp.float32).reshape(1, OUT_FEATURES)
    return w_t, b


def drift_forward(t, x, w_t, b, *, block_rows=DEFAULT_BLOCK_ROWS):
    """Pallas equivalent of Drift.forward(t, x) = relu(x @ W.T + b).

    Args:
      t:   scalar "time" (ignored, kept for signature parity with the module).
      x:   (B, 50) float32.
      w_t: (50, 50) float32 from prepare_drift_params ((in, out) layout).
      b:   (1, 50)  float32 from prepare_drift_params.
    Returns:
      (B, 50) array, dtype of x.
    """
    del t  # unused, as in the PyTorch module
    B, F = x.shape
    assert F == IN_FEATURES, f"expected {IN_FEATURES} input features, got {F}"

    # Balanced batch tiling, no wrapper-side padding:
    #  * tiles are multiples of 8 sublanes,
    #  * tail tile is a Pallas edge block (OOB reads garbage, OOB writes masked),
    #  * >= 2 grid steps when B > 8 so both v7x TensorCores engage.
    num_tiles = max(1, -(-B // block_rows))          # cdiv
    if num_tiles == 1 and B > 8:
        num_tiles = 2
    tb = _round_up(-(-B // num_tiles), 8)
    grid = (pl.cdiv(B, tb),)

    out = pl.pallas_call(
        _drift_kernel,
        out_shape=jax.ShapeDtypeStruct((B, OUT_FEATURES), jnp.float32),
        grid=grid,
        in_specs=[
            pl.BlockSpec((tb, IN_FEATURES), lambda i: (i, 0)),            # x tile streams
            pl.BlockSpec((IN_FEATURES, OUT_FEATURES), lambda i: (0, 0)),  # W VMEM-resident
            pl.BlockSpec((1, OUT_FEATURES), lambda i: (0, 0)),            # bias resident
        ],
        out_specs=pl.BlockSpec((tb, OUT_FEATURES), lambda i: (i, 0)),
        compiler_params=pltpu.CompilerParams(
            # Batch tiles are independent -> shard across v7x's 2 TensorCores.
            dimension_semantics=("parallel",),
        ),
    )(x.astype(jnp.float32), w_t, b)

    return out.astype(x.dtype)


def init_drift_params(key):
    """Deterministic init matching nn.Linear(50, 50) default scheme:
    kaiming-uniform(a=sqrt(5)) -> U(-1/sqrt(fan_in), 1/sqrt(fan_in)) for both."""
    kw, kb = jax.random.split(key)
    bound = 1.0 / math.sqrt(IN_FEATURES)
    weight = jax.random.uniform(
        kw, (OUT_FEATURES, IN_FEATURES), jnp.float32, -bound, bound)
    bias = jax.random.uniform(
        kb, (OUT_FEATURES,), jnp.float32, -bound, bound)
    return weight, bias


if __name__ == "__main__":
    key = jax.random.PRNGKey(0)
    k_param, k1, k2, k3 = jax.random.split(key, 4)

    weight, bias = init_drift_params(k_param)
    # One-time param conversion (pre-transposed) — out of the hot path.
    w_t, b = prepare_drift_params(weight, bias)

    t = jnp.float32(0.0)  # unused by the forward pass

    def ref(x):
        return jnp.maximum(x @ weight.T + bias, 0.0)

    # Small batch (single tile), non-multiple-of-8 batch (edge block on the
    # tail), and a larger batch exercising grid > 1 with a short last tile.
    for name, bsz, k in (("small", 8, k1), ("odd", 13, k2), ("big", 520, k3)):
        x = jax.random.normal(k, (bsz, IN_FEATURES), jnp.float32)
        out = jax.block_until_ready(drift_forward(t, x, w_t, b))
        assert out.shape == (bsz, OUT_FEATURES), name
        assert jnp.allclose(out, ref(x), atol=1e-5, rtol=1e-5), name

    print("KERNEL_OK")
</pallas_src>

<mosaic_0001>
module attributes {stable_mosaic.version = 11 : i64} {
  func.func @_drift_kernel(%arg0: i32, %arg1: memref<8x50xf32, #tpu.memory_space<vmem>>, %arg2: memref<50x50xf32, #tpu.memory_space<vmem>>, %arg3: memref<1x50xf32, #tpu.memory_space<vmem>>, %arg4: memref<8x50xf32, #tpu.memory_space<vmem>>) attributes {dimension_semantics = [#tpu.dimension_semantics<parallel>], iteration_bounds = array<i64: 1>, scalar_prefetch = 0 : i64, scratch_operands = 0 : i64, tpu.core_type = #tpu.core_type<tc>, window_params = [{transform_indices = @transform_0, window_bounds = array<i64: 8, 50>}, {pipeline_mode = #tpu.pipeline_mode<synchronous>, transform_indices = @transform_1, window_bounds = array<i64: 50, 50>}, {pipeline_mode = #tpu.pipeline_mode<synchronous>, transform_indices = @transform_2, window_bounds = array<i64: 1, 50>}, {transform_indices = @transform_3, window_bounds = array<i64: 8, 50>}]} {
    %c0 = arith.constant 0 : index
    %c0_0 = arith.constant 0 : index
    %0 = vector.load %arg1[%c0, %c0_0] : memref<8x50xf32, #tpu.memory_space<vmem>>, vector<8x50xf32>
    %c0_1 = arith.constant 0 : index
    %c0_2 = arith.constant 0 : index
    %1 = vector.load %arg2[%c0_1, %c0_2] : memref<50x50xf32, #tpu.memory_space<vmem>>, vector<50x50xf32>
    %cst = arith.constant dense<0.000000e+00> : vector<8x50xf32>
    %2 = tpu.matmul %0, %1, %cst {dimension_numbers = #tpu.dot_dimension_numbers<[1], [0], [0], [1], [0, 0, 1, 1], [], []>} : vector<8x50xf32>, vector<50x50xf32>, vector<8x50xf32> -> vector<8x50xf32>
    %c0_3 = arith.constant 0 : index
    %c0_4 = arith.constant 0 : index
    %3 = vector.load %arg3[%c0_3, %c0_4] : memref<1x50xf32, #tpu.memory_space<vmem>>, vector<1x50xf32>
    %4 = vector.broadcast %3 : vector<1x50xf32> to vector<8x50xf32>
    %5 = arith.addf %2, %4 : vector<8x50xf32>
    %cst_5 = arith.constant 0.000000e+00 : f32
    %6 = vector.broadcast %cst_5 : f32 to vector<8x50xf32>
    %7 = arith.maximumf %5, %6 : vector<8x50xf32>
    %c0_6 = arith.constant 0 : index
    %c0_7 = arith.constant 0 : index
    %8 = vector.load %arg4[%c0_6, %c0_7] : memref<8x50xf32, #tpu.memory_space<vmem>>, vector<8x50xf32>
    tpu.vector_store %arg4[%c0_6, %c0_7], %7 {strides = array<i32>} : memref<8x50xf32, #tpu.memory_space<vmem>>, vector<8x50xf32>,
    return
  }
  func.func @transform_0(%arg0: i32) -> (i32, i32) {
    %c0_i32 = arith.constant 0 : i32
    %c0_i32_0 = arith.constant 0 : i32
    return %arg0, %c0_i32 : i32, i32
  }
  func.func @transform_1(%arg0: i32) -> (i32, i32) {
    %c0_i32 = arith.constant 0 : i32
    %c0_i32_0 = arith.constant 0 : i32
    %c0_i32_1 = arith.constant 0 : i32
    return %c0_i32, %c0_i32_0 : i32, i32
  }
  func.func @transform_2(%arg0: i32) -> (i32, i32) {
    %c0_i32 = arith.constant 0 : i32
    %c0_i32_0 = arith.constant 0 : i32
    %c0_i32_1 = arith.constant 0 : i32
    return %c0_i32, %c0_i32_0 : i32, i32
  }
  func.func @transform_3(%arg0: i32) -> (i32, i32) {
    %c0_i32 = arith.constant 0 : i32
    %c0_i32_0 = arith.constant 0 : i32
    return %arg0, %c0_i32 : i32, i32
  }
}

</mosaic_0001>

<bundles_post_ra>
// kernel: tpu_custom_call.1
= control target key start
LH: loop header
LB: loop body
LE: loop exit
PB: predicated region body
PF: predicated region fallthrough
CT: control target
= control target key end

     0   :  { %8 = vsyncpa [#allocation3], 0  ;;  %s343_s0 = inlined_call_operand.hbm [shape: f32[8,50], index: 0, kind: input, shape index: {}]   ;;  %s344_s1 = inlined_call_operand.hbm [shape: f32[50,50], index: 1, kind: input, shape index: {}]   ;;  %s345_s2 = inlined_call_operand.vmem [shape: f32[1,50], index: 2, kind: input, shape index: {}]   ;;  %s346_s3 = inlined_call_operand.hbm [shape: f32[8,50], index: 3, kind: output, shape index: {}]  }
   0x1   :  { %9 = vsyncpa [#allocation6], 0 }
   0x2   :  { %10 = vsyncpa [#allocation4], 0  ;;  %s269_s12 = smov [#allocation2]   ;;  %s270_s14 = smov [#allocation5]  }
   0x3   :  { %s17_s13 = sshll.u32 %s269_s12, 4  ;;  %s26_s15 = sshll.u32 %s270_s14, 4  ;;  %s18_s13 = int_to_ptr.vmem [resolvable:$true] %s17_s13  ;;  %s297_s15 = int_to_ptr.vmem [resolvable:$true] %s26_s15 }
   0x4   :  { %s197_s18 = scalar_lea.hbm %s343_s0, 128 }
   0x5   :  { %p198_p0 = scmp.ne.s32.totalorder %s343_s0, %s197_s18  ;;  %p201_p1 = scmp.lt.u32.totalorder %s197_s18, %s343_s0 }
   0x7   :  { %p203_p2 = pnand %p201_p1, %p198_p0 }
   0x9   :  { %206 = shalt.err (!%p203_p2)
}
   0xa   :  { %s207_s23 = scalar_lea.vmem %s18_s13, 128  ;;  %p212_p4 = scmp.lt.s32.totalorder %s18_s13, %s18_s13 }
   0xb   :  { %p208_p3 = scmp.ne.s32.totalorder %s18_s13, %s207_s23  ;;  %p213_p5 = scmp.lt.s32.totalorder %s207_s23, %s207_s23 }
   0xd   :  { %p214_p6 = por %p213_p5, %p212_p4 }
   0xf   :  { %p215_p7 = pnand %p214_p6, %p208_p3 }
  0x11   :  { %218 = shalt.err (!%p215_p7)
}
  0x12   :  { %20 = dma.hbm_to_vmem [thread:$0]  %s343_s0, 128, %s18_s13, [#allocation3]  }
  0x13   :  { %s219_s28 = scalar_lea.hbm %s344_s1, 896 }
  0x14   :  { %p220_p8 = scmp.ne.s32.totalorder %s344_s1, %s219_s28  ;;  %p223_p9 = scmp.lt.u32.totalorder %s219_s28, %s344_s1 }
  0x16   :  { %p225_p10 = pnand %p223_p9, %p220_p8 }
  0x18   :  { %228 = shalt.err (!%p225_p10)
}
  0x19   :  { %s229_s6 = scalar_lea.vmem %s297_s15, 896  ;;  %p234_p12 = scmp.lt.s32.totalorder %s297_s15, %s297_s15 }
  0x1a   :  { %p230_p11 = scmp.ne.s32.totalorder %s297_s15, %s229_s6  ;;  %p235_p13 = scmp.lt.s32.totalorder %s229_s6, %s229_s6 }
  0x1c   :  { %p236_p0 = por %p235_p13, %p234_p12 }
  0x1e   :  { %p237_p1 = pnand %p236_p0, %p230_p11 }
  0x20   :  { %240 = shalt.err (!%p237_p1)
}
  0x21   :  { %s271_s0 = smov 128   ;;  %s272_s7 = smov 8  }
  0x22   :  { %32 = dma.hbm_to_vmem [thread:$0]  %s344_s1, 896, %s297_s15, [#allocation6], %s271_s0, %s271_s0, %s272_s7  }
  0x23   :  { %263 = dma.done.wait [#allocation3], 128  }
  0x24   :  { %264 = vsyncadd [#allocation3], 4294967168 }
  0x25   :  { %265 = dma.done.wait [#allocation6], 896  }
  0x26   :  { %266 = vsyncadd [#allocation6], 4294966400  ;;  %v273_v0 = vmov 0.0|0.0   ;;  %vm274_vm0 = vmmov 0   ;;  %v275_v1 = vmov 0.0   ;;  %v42_v2 = vld [vmem:[#allocation5] sm:$0xff] }
  0x27   :  { %180 = vmatprep.subr.bf16.mxu0 %v273_v0  ;;  %177 = vmatprep.mubr.msk.f32.mxu0 %vm274_vm0, %v275_v1  ;;  %v43_v3 = vld [vmem:[#allocation5 + $0x8] sm:$0xff]  ;;  %v44_v4 = vld [vmem:[#allocation5 + $0x10] sm:$0xff]  ;;  %v45_v6 = vld [vmem:[#allocation5 + $0x18] sm:$0xff]  ;;  %vm60_vm1 = vcmask 1041408   ;;  %vm56_vm2 = vcmask 408576   ;;  %s276_s11 = smov [#allocation7]  }
  0x28   :  { %v181_v5 = vpack.c.bf16 %v43_v3, %v42_v2  ;;  %v184_v7 = vpack.c.bf16 %v45_v6, %v44_v4  ;;  %v46_v8 = vld [vmem:[#allocation5 + $0x20] sm:$0xff]  ;;  %v47_v9 = vld [vmem:[#allocation5 + $0x28] sm:$0xff]  ;;  %v48_v11 = vld [vmem:[#allocation5 + $0x30] sm:$0x3]  ;;  %s142_s12 = sshll.u32 %s276_s11, 4  ;;  %s143_s12 = int_to_ptr.vmem [resolvable:$true] %s142_s12 }
  0x29   :  { %v187_v10 = vpack.c.bf16 %v47_v9, %v46_v8  ;;  %v41_v12 = vld [vmem:[#allocation2] sm:$0xff]  ;;  %s241_s13 = scalar_lea.vmem %s143_s12, 128  ;;  %p246_p3 = scmp.lt.s32.totalorder %s143_s12, %s143_s12 }
  0x2a   :  { %182 = vmatpush3.bf16.msra.mxu0 %v181_v5  ;;  %v152_v13 = vld [vmem:[%s345_s2] ss:$0 sm:$0xff]  ;;  %p242_p2 = scmp.ne.s32.totalorder %s143_s12, %s241_s13  ;;  %p247_p4 = scmp.lt.s32.totalorder %s241_s13, %s241_s13 }
  0x2b   :  { %183 = vmatprep.subr.bf16.mxu0 %v273_v0 }
  0x2c   :  { %p248_p5 = por %p247_p4, %p246_p3 }
  0x2e   :  { %185 = vmatpush3.bf16.msra.mxu0 %v184_v7  ;;  %p249_p6 = pnand %p248_p5, %p242_p2 }
  0x2f   :  { %186 = vmatprep.subr.bf16.mxu0 %v273_v0 }
  0x32   :  { %188 = vmatpush3.bf16.msra.mxu0 %v187_v10 }
  0x33   :  { %175 = vmatprep.subr.mxu0 %v275_v1 }
  0x36   :  { %176 = vmatpush3.msk.msra.mxu0 %vm60_vm1, %v48_v11 }
  0x37   :  { %178 = vmatmul.mubr.msk.f32.vlgmr.msra.gmra.mrb[0].mxu0 %vm56_vm2, %v41_v12 }
 0x10a   :  { %v130_v14 = vpop.f32.mrb[0].mxu0 }
 0x10b   :  { %v131_v15 = vadd.f32 %v152_v13, %v130_v14  ;;  %v179_v16 = vpop.f32.mrb[1].mxu0 }
 0x10d   :  { %v134_v17 = vmax.f32 %v131_v15, 0.0 }
 0x10f   :  { %135 = vst.msk [vmem:[#allocation7] sm:$0xff] %vm56_vm2, %v134_v17 }
 0x110   :  { %252 = shalt.err (!%p249_p6)
}
 0x111   :  { %s253_s16 = scalar_lea.hbm %s346_s3, 128 }
 0x112   :  { %p254_p7 = scmp.ne.s32.totalorder %s346_s3, %s253_s16  ;;  %p257_p8 = scmp.lt.u32.totalorder %s253_s16, %s346_s3 }
 0x114   :  { %p259_p9 = pnand %p257_p8, %p254_p7 }
 0x116   :  { %262 = shalt.err (!%p259_p9)
}
 0x117   :  { %145 = dma.vmem_to_hbm [thread:$0]  %s143_s12, 128, %s346_s3, [#allocation4]  }
 0x118   :  { %267 = dma.done.wait [#allocation4], 128  }
 0x119   :  { %268 = vsyncadd [#allocation4], 4294967168 }
 0x11a   :  { %149 = vsyncpa [#allocation3], 1 }
 0x11b   :  { %150 = vsyncpa [#allocation6], 1 }
 0x11c   :  { %151 = vsyncpa [#allocation4], 1 }

</bundles_post_ra>
